<compile_context>
chip_gen: v5e
topology: v5e:2x2
jax: 0.10.0
libtpu: 0.0.40
codegen_flags: <defaults>
</compile_context>

<pallas_src>
import math

import jax
import jax.numpy as jnp
from jax import lax
from jax.experimental import pallas as pl
from jax.experimental.pallas import tpu as pltpu

_EPS = 1e-8                     # torch.cosine_similarity default eps
_ACC_W = 128                    # lane width of the strip accumulators (1 vreg of lanes)
_GROUP = 8                      # 128-lane slices folded in vregs per scratch update
_MAX_SLICES = 256               # cap on statically-unrolled 128-lane slices per step
_MAX_TB = 256                   # max rows per row block
_PALLAS_MIN_BYTES = 1 << 20     # below this, fused XLA wins (launch overhead)


def _stats_kernel(w_ref, m_ref, dot_ref, nw2_ref, nm2_ref,
                  dot_acc, nw2_acc, nm2_acc):
    """Per-(split, row-block, col-block) step: accumulate per-row partial
    sums of w*m, w*w, m*m into (tb, 128) lane-dense strip accumulators; emit
    the per-row scalars (single cross-lane reduce) at the last col-block."""
    k = pl.program_id(2)

    @pl.when(k == 0)
    def _init():
        dot_acc[...] = jnp.zeros_like(dot_acc)
        nw2_acc[...] = jnp.zeros_like(nw2_acc)
        nm2_acc[...] = jnp.zeros_like(nm2_acc)

    td = w_ref.shape[1]
    n_slices = td // _ACC_W
    assert n_slices * _ACC_W == td  # td is a multiple of 128 by construction

    # NOTE(v7x): at ~3.2 TB/s the cast+3mul+3add chain can become VALU-bound;
    # a further optimization would do the multiplies in bf16 or offload the
    # column reduction to the idle MXU.  Not done here (keeps v5e exact-f32 path).
    def accum_run(first_slice, count):
        # `count` consecutive 128-lane slices (all static offsets -> pure vreg
        # selection), partial-summed in registers, one scratch update at the end.
        d = a = b = None
        for c in range(count):
            lo = (first_slice + c) * _ACC_W
            w = w_ref[:, lo:lo + _ACC_W].astype(jnp.float32)
            m = m_ref[:, lo:lo + _ACC_W].astype(jnp.float32)
            if d is None:
                d, a, b = w * m, w * w, m * m
            else:
                d += w * m
                a += w * w
                b += m * m
        dot_acc[...] += d
        nw2_acc[...] += a
        nm2_acc[...] += b

    full = n_slices // _GROUP
    for g in range(full):                       # fully unrolled strip loop
        accum_run(g * _GROUP, _GROUP)
    left = n_slices - full * _GROUP
    if left:
        accum_run(full * _GROUP, left)

    @pl.when(k == pl.num_programs(2) - 1)
    def _finalize():
        dot_ref[...] = jnp.sum(dot_acc[...], axis=1, keepdims=True)
        nw2_ref[...] = jnp.sum(nw2_acc[...], axis=1, keepdims=True)
        nm2_ref[...] = jnp.sum(nm2_acc[...], axis=1, keepdims=True)


def _chip_budget():
    """(per-input block byte target, vmem_limit cap) from the chip's VMEM size."""
    vmem_cap = None
    try:
        info = pltpu.get_tpu_info()
        for name in ("vmem_capacity_bytes", "vmem_bytes", "vmem_size_bytes"):
            v = getattr(info, name, None)
            if v:
                vmem_cap = int(v)
                break
    except Exception:
        vmem_cap = None
    if vmem_cap is None:
        vmem_cap = 64 << 20                 # conservative: assume v7x-sized VMEM
    if vmem_cap >= (96 << 20):              # v5e / v6e: 128 MiB physical VMEM
        return 8 << 20, 96 << 20
    return 6 << 20, 48 << 20                # v7x: 64 MiB per TensorCore


def _choose_layout(B, D, itemsize, max_block_bytes):
    """Pick (pack, R, Dp, tb, nb, td, nk, dk, rem) for a (B, D) problem."""
    # Dtype-native sublane packing: fold each sample into `pack` consecutive
    # rows so small batches fill every sublane of every vreg (8 f32 / 16 bf16).
    native_sub = min(32, max(8, 32 // max(1, itemsize)))
    p0 = native_sub // math.gcd(B, native_sub)
    pack = p0 if (p0 > 1 and D % p0 == 0 and B * p0 <= _MAX_TB) else 1
    R, Dp = B * pack, D // pack

    tb = R if R <= _MAX_TB else _MAX_TB     # pack is only enabled when R <= _MAX_TB
    nb = -(-R // tb)

    # Columns per block: multiple of 128, sized to ~max_block_bytes per input,
    # capped so the fully-unrolled in-kernel strip loop stays a reasonable size.
    td_cap = (max_block_bytes // (itemsize * tb)) // _ACC_W * _ACC_W
    td_cap = max(_ACC_W, min(td_cap, _MAX_SLICES * _ACC_W))
    nk = max(1, -(-Dp // td_cap))           # number of column blocks
    td = min(td_cap, (Dp // nk) // _ACC_W * _ACC_W)
    dk = nk * td                            # columns covered by the kernel
    rem = Dp - dk                           # ragged tail -> fused XLA epilogue
    return pack, R, Dp, tb, nb, td, nk, dk, rem


def _reference_loss(wild_emb, muta_emb, prob_muta, batch_size):
    """Plain-JAX reference mirroring the PyTorch code (also the tiny-size path)."""
    w = wild_emb.reshape(batch_size, -1).astype(jnp.float32)
    m = muta_emb.reshape(batch_size, -1).astype(jnp.float32)
    p = prob_muta.reshape(batch_size).astype(jnp.float32)
    dot = jnp.sum(w * m, axis=1)
    nw = jnp.maximum(jnp.sqrt(jnp.sum(w * w, axis=1)), _EPS)
    nm = jnp.maximum(jnp.sqrt(jnp.sum(m * m, axis=1)), _EPS)
    cos = dot / (nw * nm)
    return jnp.mean(jnp.abs(cos - 2.0 + p / jnp.max(p)))


def pro_muta_contrast_loss(wild_emb, muta_emb, prob_muta, batch_size,
                           temperature=0.07, *, use_pallas=None,
                           max_block_bytes=None):
    """JAX/Pallas equivalent of ProMutaContrastLoss.forward."""
    del temperature  # stored by the module, unused in forward()
    B = int(batch_size)

    w = jnp.reshape(wild_emb, (B, -1))      # native dtype — no wrapper upcast
    m = jnp.reshape(muta_emb, (B, -1))
    D = w.shape[1]
    p = jnp.reshape(prob_muta, (B,)).astype(jnp.float32)

    itemsize = max(w.dtype.itemsize, m.dtype.itemsize)
    if use_pallas is None:
        # Tiny problems are pure launch/step overhead in Pallas; let XLA fuse.
        use_pallas = 2 * B * D * itemsize >= _PALLAS_MIN_BYTES

    block_budget, vmem_cap = _chip_budget()
    if max_block_bytes is None:
        max_block_bytes = block_budget

    pack, R, Dp, tb, nb, td, nk, dk, rem = _choose_layout(B, D, itemsize,
                                                          max_block_bytes)
    if not use_pallas or td == 0:
        return _reference_loss(wild_emb, muta_emb, prob_muta, B)

    # Free row-major reshape: each sample spans `pack` consecutive rows.
    w2 = w.reshape(R, Dp)
    m2 = m.reshape(R, Dp)

    # Split-K across a leading "parallel" grid axis when there is only one row
    # block, so a v7x megacore uses both TensorCores (a couple of extra tiny
    # finalize writes on single-TC v5e/v6e — negligible).
    if nb == 1 and nk >= 2 and nk % 2 == 0:
        nsplit, nk_s = 2, nk // 2
    else:
        nsplit, nk_s = 1, nk

    # VMEM budget derived from the chosen block size: 2 inputs x 2 pipeline
    # buffers x block + strip-accumulator scratch + margin, capped per chip.
    block_bytes = tb * td * itemsize
    vmem_limit = 2 * 2 * block_bytes + 3 * tb * _ACC_W * 4 + (4 << 20)
    vmem_limit = int(min(max(vmem_limit, 8 << 20), vmem_cap))

    # NOTE: when nb > 1 and R % tb != 0, the last row block reads rows past R.
    # This is benign: all stats are strictly per-row (never mixed across rows,
    # pack is disabled when nb > 1) and out-of-bounds output rows are dropped
    # on write.  Do not add any cross-row mixing inside the kernel.
    out_sds = jax.ShapeDtypeStruct((nsplit, R, 1), jnp.float32)
    in_map = lambda s, i, k, nks=nk_s: (i, s * nks + k)
    out_spec = pl.BlockSpec((None, tb, 1), lambda s, i, k: (s, i, 0))

    dot_k, nw2_k, nm2_k = pl.pallas_call(
        _stats_kernel,
        out_shape=(out_sds, out_sds, out_sds),
        grid_spec=pltpu.PrefetchScalarGridSpec(
            num_scalar_prefetch=0,
            grid=(nsplit, nb, nk_s),
            in_specs=[pl.BlockSpec((tb, td), in_map),
                      pl.BlockSpec((tb, td), in_map)],
            out_specs=(out_spec, out_spec, out_spec),
            scratch_shapes=[pltpu.VMEM((tb, _ACC_W), jnp.float32)] * 3,
        ),
        compiler_params=pltpu.CompilerParams(
            dimension_semantics=("parallel", "parallel", "arbitrary"),
            vmem_limit_bytes=vmem_limit,
        ),
    )(w2, m2)

    # O(B) epilogue (fused XLA): recombine packed rows + splits, ragged tail,
    # cosine, prob normalization, abs-mean.
    def per_sample(x):                      # (nsplit, R, 1) -> (B,)
        return x.reshape(nsplit, B, pack).sum(axis=(0, 2))

    dot, nw2, nm2 = per_sample(dot_k), per_sample(nw2_k), per_sample(nm2_k)

    if rem:
        # Ragged tail columns (< 128 * nk per row) — disjoint from the kernel's
        # columns, so no duplicated HBM traffic and no wrapper-side padding.
        wt = w2[:, dk:].astype(jnp.float32)
        mt = m2[:, dk:].astype(jnp.float32)
        dot = dot + jnp.sum(wt * mt, axis=1).reshape(B, pack).sum(axis=1)
        nw2 = nw2 + jnp.sum(wt * wt, axis=1).reshape(B, pack).sum(axis=1)
        nm2 = nm2 + jnp.sum(mt * mt, axis=1).reshape(B, pack).sum(axis=1)

    eps2 = jnp.float32(_EPS * _EPS)
    # max(||x||, eps) == sqrt(max(||x||^2, eps^2)) — matches torch's per-norm clamp.
    cos = dot * lax.rsqrt(jnp.maximum(nw2, eps2) * jnp.maximum(nm2, eps2))
    # NOTE: max(prob_muta) == 0 yields inf/nan, exactly as in the PyTorch code.
    return jnp.mean(jnp.abs(cos - 2.0 + p / jnp.max(p)))


if __name__ == "__main__":
    key = jax.random.PRNGKey(0)
    ks = jax.random.split(key, 12)

    # Case 1: tiny f32 NCHW embeddings (B=2, C=4, H=W=16) — exercises the
    # dtype-native sublane-packing path ((2,1024) -> (8,256)), one grid step.
    B1 = 2
    wild1 = jax.random.normal(ks[0], (B1, 4, 16, 16), dtype=jnp.float32)
    muta1 = jax.random.normal(ks[1], (B1, 4, 16, 16), dtype=jnp.float32)
    prob1 = jax.random.uniform(ks[2], (B1,), minval=0.1, maxval=1.0)
    out1 = jax.block_until_ready(
        pro_muta_contrast_loss(wild1, muta1, prob1, B1, temperature=0.07,
                               use_pallas=True))
    ref1 = _reference_loss(wild1, muta1, prob1, B1)
    assert jnp.allclose(out1, ref1, rtol=1e-4, atol=1e-5), (out1, ref1)

    # Case 2: bf16 inputs with a small per-block budget so the reduction splits
    # into two column blocks -> split-K over the leading "parallel" axis
    # (both v7x TensorCores), bf16->f32 cast inside the strip loop.
    B2, D2 = 16, 8192
    wild2 = jax.random.normal(ks[3], (B2, D2), dtype=jnp.bfloat16)
    muta2 = jax.random.normal(ks[4], (B2, D2), dtype=jnp.bfloat16)
    prob2 = jax.random.uniform(ks[5], (B2,), minval=0.1, maxval=1.0)
    out2 = jax.block_until_ready(
        pro_muta_contrast_loss(wild2, muta2, prob2, B2, use_pallas=True,
                               max_block_bytes=128 * 1024))
    ref2 = _reference_loss(wild2, muta2, prob2, B2)
    assert jnp.allclose(out2, ref2, rtol=2e-3, atol=2e-3), (out2, ref2)

    # Case 3: non-128-multiple feature dim (D=1000) — ragged tail columns are
    # folded in by the fused XLA epilogue (no wrapper-side padding, no masking).
    B3, D3 = 8, 1000
    wild3 = jax.random.normal(ks[6], (B3, D3), dtype=jnp.float32)
    muta3 = jax.random.normal(ks[7], (B3, D3), dtype=jnp.float32)
    prob3 = jax.random.uniform(ks[8], (B3,), minval=0.1, maxval=1.0)
    out3 = jax.block_until_ready(
        pro_muta_contrast_loss(wild3, muta3, prob3, B3, use_pallas=True))
    ref3 = _reference_loss(wild3, muta3, prob3, B3)
    assert jnp.allclose(out3, ref3, rtol=1e-4, atol=1e-5), (out3, ref3)

    # Case 4: B=300 -> two row blocks with a partial last block (out-of-bounds
    # rows never mix with valid rows and are dropped on the output write).
    B4, D4 = 300, 512
    wild4 = jax.random.normal(ks[9], (B4, D4), dtype=jnp.float32)
    muta4 = jax.random.normal(ks[10], (B4, D4), dtype=jnp.float32)
    prob4 = jax.random.uniform(ks[11], (B4,), minval=0.1, maxval=1.0)
    out4 = jax.block_until_ready(
        pro_muta_contrast_loss(wild4, muta4, prob4, B4, use_pallas=True))
    ref4 = _reference_loss(wild4, muta4, prob4, B4)
    assert jnp.allclose(out4, ref4, rtol=1e-4, atol=1e-5), (out4, ref4)

    print("KERNEL_OK")
</pallas_src>

<mosaic_0001>
module attributes {stable_mosaic.version = 11 : i64} {
  func.func @_stats_kernel(%arg0: i32, %arg1: i32, %arg2: i32, %arg3: memref<8x256xf32, #tpu.memory_space<vmem>>, %arg4: memref<8x256xf32, #tpu.memory_space<vmem>>, %arg5: memref<1x8x1xf32, #tpu.memory_space<vmem>>, %arg6: memref<1x8x1xf32, #tpu.memory_space<vmem>>, %arg7: memref<1x8x1xf32, #tpu.memory_space<vmem>>, %arg8: memref<8x128xf32, #tpu.memory_space<vmem>>, %arg9: memref<8x128xf32, #tpu.memory_space<vmem>>, %arg10: memref<8x128xf32, #tpu.memory_space<vmem>>) attributes {dimension_semantics = [#tpu.dimension_semantics<parallel>, #tpu.dimension_semantics<parallel>, #tpu.dimension_semantics<arbitrary>], iteration_bounds = array<i64: 1, 1, 1>, scalar_prefetch = 0 : i64, scratch_operands = 3 : i64, tpu.core_type = #tpu.core_type<tc>, window_params = [{transform_indices = @transform_0, window_bounds = array<i64: 8, 256>}, {transform_indices = @transform_1, window_bounds = array<i64: 8, 256>}, {transform_indices = @transform_2, window_bounds = array<i64: 1, 8, 1>}, {transform_indices = @transform_3, window_bounds = array<i64: 1, 8, 1>}, {transform_indices = @transform_4, window_bounds = array<i64: 1, 8, 1>}]} {
    %c0_i32 = arith.constant 0 : i32
    %0 = arith.cmpi eq, %arg2, %c0_i32 : i32
    %1 = arith.extui %0 : i1 to i32
    %c0_i32_0 = arith.constant 0 : i32
    %2 = arith.cmpi ne, %1, %c0_i32_0 : i32
    scf.if %2 {
      %cst = arith.constant 0.000000e+00 : f32
      %28 = vector.broadcast %cst : f32 to vector<8x128xf32>
      %c0_21 = arith.constant 0 : index
      %c0_22 = arith.constant 0 : index
      %29 = vector.load %arg8[%c0_21, %c0_22] : memref<8x128xf32, #tpu.memory_space<vmem>>, vector<8x128xf32>
      tpu.vector_store %arg8[%c0_21, %c0_22], %28 {strides = array<i32>} : memref<8x128xf32, #tpu.memory_space<vmem>>, vector<8x128xf32>,
      %cst_23 = arith.constant 0.000000e+00 : f32
      %30 = vector.broadcast %cst_23 : f32 to vector<8x128xf32>
      %c0_24 = arith.constant 0 : index
      %c0_25 = arith.constant 0 : index
      %31 = vector.load %arg9[%c0_24, %c0_25] : memref<8x128xf32, #tpu.memory_space<vmem>>, vector<8x128xf32>
      tpu.vector_store %arg9[%c0_24, %c0_25], %30 {strides = array<i32>} : memref<8x128xf32, #tpu.memory_space<vmem>>, vector<8x128xf32>,
      %cst_26 = arith.constant 0.000000e+00 : f32
      %32 = vector.broadcast %cst_26 : f32 to vector<8x128xf32>
      %c0_27 = arith.constant 0 : index
      %c0_28 = arith.constant 0 : index
      %33 = vector.load %arg10[%c0_27, %c0_28] : memref<8x128xf32, #tpu.memory_space<vmem>>, vector<8x128xf32>
      tpu.vector_store %arg10[%c0_27, %c0_28], %32 {strides = array<i32>} : memref<8x128xf32, #tpu.memory_space<vmem>>, vector<8x128xf32>,
    } else {
    }
    %c0 = arith.constant 0 : index
    %c0_1 = arith.constant 0 : index
    %3 = vector.load %arg3[%c0, %c0_1] : memref<8x256xf32, #tpu.memory_space<vmem>>, vector<8x128xf32>
    %c0_2 = arith.constant 0 : index
    %c0_3 = arith.constant 0 : index
    %4 = vector.load %arg4[%c0_2, %c0_3] : memref<8x256xf32, #tpu.memory_space<vmem>>, vector<8x128xf32>
    %5 = arith.mulf %3, %4 : vector<8x128xf32>
    %6 = arith.mulf %3, %3 : vector<8x128xf32>
    %7 = arith.mulf %4, %4 : vector<8x128xf32>
    %c0_4 = arith.constant 0 : index
    %c128 = arith.constant 128 : index
    %8 = vector.load %arg3[%c0_4, %c128] : memref<8x256xf32, #tpu.memory_space<vmem>>, vector<8x128xf32>
    %c0_5 = arith.constant 0 : index
    %c128_6 = arith.constant 128 : index
    %9 = vector.load %arg4[%c0_5, %c128_6] : memref<8x256xf32, #tpu.memory_space<vmem>>, vector<8x128xf32>
    %10 = arith.mulf %8, %9 : vector<8x128xf32>
    %11 = arith.addf %5, %10 : vector<8x128xf32>
    %12 = arith.mulf %8, %8 : vector<8x128xf32>
    %13 = arith.addf %6, %12 : vector<8x128xf32>
    %14 = arith.mulf %9, %9 : vector<8x128xf32>
    %15 = arith.addf %7, %14 : vector<8x128xf32>
    %c0_7 = arith.constant 0 : index
    %c0_8 = arith.constant 0 : index
    %16 = vector.load %arg8[%c0_7, %c0_8] : memref<8x128xf32, #tpu.memory_space<vmem>>, vector<8x128xf32>
    %17 = arith.addf %16, %11 : vector<8x128xf32>
    %c0_9 = arith.constant 0 : index
    %c0_10 = arith.constant 0 : index
    %18 = vector.load %arg8[%c0_9, %c0_10] : memref<8x128xf32, #tpu.memory_space<vmem>>, vector<8x128xf32>
    tpu.vector_store %arg8[%c0_9, %c0_10], %17 {strides = array<i32>} : memref<8x128xf32, #tpu.memory_space<vmem>>, vector<8x128xf32>,
    %c0_11 = arith.constant 0 : index
    %c0_12 = arith.constant 0 : index
    %19 = vector.load %arg9[%c0_11, %c0_12] : memref<8x128xf32, #tpu.memory_space<vmem>>, vector<8x128xf32>
    %20 = arith.addf %19, %13 : vector<8x128xf32>
    %c0_13 = arith.constant 0 : index
    %c0_14 = arith.constant 0 : index
    %21 = vector.load %arg9[%c0_13, %c0_14] : memref<8x128xf32, #tpu.memory_space<vmem>>, vector<8x128xf32>
    tpu.vector_store %arg9[%c0_13, %c0_14], %20 {strides = array<i32>} : memref<8x128xf32, #tpu.memory_space<vmem>>, vector<8x128xf32>,
    %c0_15 = arith.constant 0 : index
    %c0_16 = arith.constant 0 : index
    %22 = vector.load %arg10[%c0_15, %c0_16] : memref<8x128xf32, #tpu.memory_space<vmem>>, vector<8x128xf32>
    %23 = arith.addf %22, %15 : vector<8x128xf32>
    %c0_17 = arith.constant 0 : index
    %c0_18 = arith.constant 0 : index
    %24 = vector.load %arg10[%c0_17, %c0_18] : memref<8x128xf32, #tpu.memory_space<vmem>>, vector<8x128xf32>
    tpu.vector_store %arg10[%c0_17, %c0_18], %23 {strides = array<i32>} : memref<8x128xf32, #tpu.memory_space<vmem>>, vector<8x128xf32>,
    %c0_i32_19 = arith.constant 0 : i32
    %25 = arith.cmpi eq, %arg2, %c0_i32_19 : i32
    %26 = arith.extui %25 : i1 to i32
    %c0_i32_20 = arith.constant 0 : i32
    %27 = arith.cmpi ne, %26, %c0_i32_20 : i32
    scf.if %27 {
      %c0_21 = arith.constant 0 : index
      %c0_22 = arith.constant 0 : index
      %28 = vector.load %arg8[%c0_21, %c0_22] : memref<8x128xf32, #tpu.memory_space<vmem>>, vector<8x128xf32>
      %cst = arith.constant dense<0.000000e+00> : vector<8xf32>
      %29 = vector.multi_reduction <add>, %28, %cst [1] : vector<8x128xf32> to vector<8xf32>
      %30 = vector.shape_cast %29 : vector<8xf32> to vector<8x1xf32>
      %c0_23 = arith.constant 0 : index
      %c0_24 = arith.constant 0 : index
      %c0_25 = arith.constant 0 : index
      %31 = vector.load %arg5[%c0_23, %c0_24, %c0_25] : memref<1x8x1xf32, #tpu.memory_space<vmem>>, vector<1x8x1xf32>
      %32 = vector.shape_cast %31 : vector<1x8x1xf32> to vector<8x1xf32>
      %33 = vector.shape_cast %30 : vector<8x1xf32> to vector<1x8x1xf32>
      tpu.vector_store %arg5[%c0_23, %c0_24, %c0_25], %33 {strides = array<i32>} : memref<1x8x1xf32, #tpu.memory_space<vmem>>, vector<1x8x1xf32>,
      %c0_26 = arith.constant 0 : index
      %c0_27 = arith.constant 0 : index
      %34 = vector.load %arg9[%c0_26, %c0_27] : memref<8x128xf32, #tpu.memory_space<vmem>>, vector<8x128xf32>
      %cst_28 = arith.constant dense<0.000000e+00> : vector<8xf32>
      %35 = vector.multi_reduction <add>, %34, %cst_28 [1] : vector<8x128xf32> to vector<8xf32>
      %36 = vector.shape_cast %35 : vector<8xf32> to vector<8x1xf32>
      %c0_29 = arith.constant 0 : index
      %c0_30 = arith.constant 0 : index
      %c0_31 = arith.constant 0 : index
      %37 = vector.load %arg6[%c0_29, %c0_30, %c0_31] : memref<1x8x1xf32, #tpu.memory_space<vmem>>, vector<1x8x1xf32>
      %38 = vector.shape_cast %37 : vector<1x8x1xf32> to vector<8x1xf32>
      %39 = vector.shape_cast %36 : vector<8x1xf32> to vector<1x8x1xf32>
      tpu.vector_store %arg6[%c0_29, %c0_30, %c0_31], %39 {strides = array<i32>} : memref<1x8x1xf32, #tpu.memory_space<vmem>>, vector<1x8x1xf32>,
      %c0_32 = arith.constant 0 : index
      %c0_33 = arith.constant 0 : index
      %40 = vector.load %arg10[%c0_32, %c0_33] : memref<8x128xf32, #tpu.memory_space<vmem>>, vector<8x128xf32>
      %cst_34 = arith.constant dense<0.000000e+00> : vector<8xf32>
      %41 = vector.multi_reduction <add>, %40, %cst_34 [1] : vector<8x128xf32> to vector<8xf32>
      %42 = vector.shape_cast %41 : vector<8xf32> to vector<8x1xf32>
      %c0_35 = arith.constant 0 : index
      %c0_36 = arith.constant 0 : index
      %c0_37 = arith.constant 0 : index
      %43 = vector.load %arg7[%c0_35, %c0_36, %c0_37] : memref<1x8x1xf32, #tpu.memory_space<vmem>>, vector<1x8x1xf32>
      %44 = vector.shape_cast %43 : vector<1x8x1xf32> to vector<8x1xf32>
      %45 = vector.shape_cast %42 : vector<8x1xf32> to vector<1x8x1xf32>
      tpu.vector_store %arg7[%c0_35, %c0_36, %c0_37], %45 {strides = array<i32>} : memref<1x8x1xf32, #tpu.memory_space<vmem>>, vector<1x8x1xf32>,
    } else {
    }
    return
  }
  func.func @transform_0(%arg0: i32, %arg1: i32, %arg2: i32) -> (i32, i32) {
    %c1_i32 = arith.constant 1 : i32
    %0 = arith.muli %arg0, %c1_i32 : i32
    %1 = arith.addi %0, %arg2 : i32
    %c0_i32 = arith.constant 0 : i32
    return %arg1, %1 : i32, i32
  }
  func.func @transform_1(%arg0: i32, %arg1: i32, %arg2: i32) -> (i32, i32) {
    %c1_i32 = arith.constant 1 : i32
    %0 = arith.muli %arg0, %c1_i32 : i32
    %1 = arith.addi %0, %arg2 : i32
    %c0_i32 = arith.constant 0 : i32
    return %arg1, %1 : i32, i32
  }
  func.func @transform_2(%arg0: i32, %arg1: i32, %arg2: i32) -> (i32, i32, i32) {
    %c0_i32 = arith.constant 0 : i32
    %c0_i32_0 = arith.constant 0 : i32
    return %arg0, %arg1, %c0_i32 : i32, i32, i32
  }
  func.func @transform_3(%arg0: i32, %arg1: i32, %arg2: i32) -> (i32, i32, i32) {
    %c0_i32 = arith.constant 0 : i32
    %c0_i32_0 = arith.constant 0 : i32
    return %arg0, %arg1, %c0_i32 : i32, i32, i32
  }
  func.func @transform_4(%arg0: i32, %arg1: i32, %arg2: i32) -> (i32, i32, i32) {
    %c0_i32 = arith.constant 0 : i32
    %c0_i32_0 = arith.constant 0 : i32
    return %arg0, %arg1, %c0_i32 : i32, i32, i32
  }
}

</mosaic_0001>

<bundles_post_ra>
// kernel: tpu_custom_call.1
= control target key start
LH: loop header
LB: loop body
LE: loop exit
PB: predicated region body
PF: predicated region fallthrough
CT: control target
= control target key end

     0   :  { %10 = vsyncpa [#allocation6], 0  ;;  %s209_s0 = inlined_call_operand.hbm [shape: f32[8,256], index: 0, kind: input, shape index: {}]   ;;  %s210_s1 = inlined_call_operand.hbm [shape: f32[8,256], index: 1, kind: input, shape index: {}]   ;;  %s211_s2 = inlined_call_operand.vmem [shape: f32[1,8,1], index: 2, kind: output, shape index: {0}]   ;;  %s212_s3 = inlined_call_operand.vmem [shape: f32[1,8,1], index: 3, kind: output, shape index: {1}]   ;;  %s213_s4 = inlined_call_operand.vmem [shape: f32[1,8,1], index: 4, kind: output, shape index: {2}]  }
   0x1   :  { %s21_s17 = sshll.u32 %s209_s0, 4  ;;  %s22_s17 = int_to_ptr.hbm [resolvable:$true] %s21_s17 }
   0x2   :  { %11 = vsyncpa [#allocation8], 0  ;;  %s167_s18 = smov [#allocation5]   ;;  %s36_s22 = sshll.u32 %s210_s1, 4  ;;  %s37_s22 = int_to_ptr.hbm [resolvable:$true] %s36_s22 }
   0x3   :  { %s23_s19 = sshll.u32 %s167_s18, 4  ;;  %s168_s23 = smov [#allocation7]   ;;  %s24_s19 = int_to_ptr.vmem [resolvable:$true] %s23_s19 }
   0x4   :  { %26 = dma.hbm_to_vmem [thread:$0]  %s22_s17, 256, %s24_s19, [#allocation6]  }
   0x5   :  { %s38_s24 = sshll.u32 %s168_s23, 4  ;;  %s39_s24 = int_to_ptr.vmem [resolvable:$true] %s38_s24 }
   0x6   :  { %41 = dma.hbm_to_vmem [thread:$0]  %s37_s22, 256, %s39_s24, [#allocation8]  }
   0x7   :  { %163 = dma.done.wait [#allocation6], 256  }
   0x8   :  { %164 = vsyncadd [#allocation6], 4294967040 }
   0x9   :  { %165 = dma.done.wait [#allocation8], 256  }
   0xa   :  { %166 = vsyncadd [#allocation8], 4294967040  ;;  %v61_v0 = vld [vmem:[#allocation5] sm:$0xff]  ;;  %v62_v1 = vld [vmem:[#allocation7] sm:$0xff]  ;;  %vm89_vm0 = vcmask 7168  }
   0xb   :  { %v66_v2 = vld [vmem:[#allocation5 + $0x8] sm:$0xff]  ;;  %v63_v3 = vmul.f32 %v62_v1, %v61_v0  ;;  %v67_v4 = vld [vmem:[#allocation7 + $0x8] sm:$0xff]  ;;  %v65_v5 = vmul.f32 %v62_v1, %v62_v1  ;;  %v64_v10 = vmul.f32 %v61_v0, %v61_v0 }
   0xc   :  { %v68_v6 = vmul.f32 %v67_v4, %v66_v2  ;;  %v72_v7 = vmul.f32 %v67_v4, %v67_v4  ;;  %v70_v11 = vmul.f32 %v66_v2, %v66_v2 }
   0xe   :  { %v69_v8 = vadd.f32 %v68_v6, %v63_v3  ;;  %v73_v9 = vadd.f32 %v72_v7, %v65_v5  ;;  %v71_v12 = vadd.f32 %v70_v11, %v64_v10 }
  0x10   :  { %87 = vadd.xlane.f32.xlu0 %v69_v8  ;;  %96 = vadd.xlane.f32.xlu1 %v73_v9 }
  0x18   :  { %92 = vadd.xlane.f32.xlu0 %v71_v12 }
  0x83   :  { %v88_v13 = vpop.xlane.xlu0 %87  ;;  %v97_v14 = vpop.xlane.xlu1 %96 }
  0x84   :  { %90 = vst.msk [vmem:[%s211_s2] sm:$0xff] %vm89_vm0, %v88_v13 }
  0x85   :  { %98 = vst.msk [vmem:[%s213_s4] sm:$0xff] %vm89_vm0, %v97_v14 }
  0x8b   :  { %v93_v15 = vpop.xlane.xlu0 %92 }
  0x8c   :  { %94 = vst.msk [vmem:[%s212_s3] sm:$0xff] %vm89_vm0, %v93_v15 }
  0x8d   :  { %111 = vsyncpa [#allocation6], 1 }
  0x8e   :  { %112 = vsyncpa [#allocation8], 1 }

</bundles_post_ra>
